<compile_context>
chip_gen: v5e
topology: v5e:2x2
jax: 0.10.0
libtpu: 0.0.40
codegen_flags: <defaults>
</compile_context>

<pallas_src>
import functools

import jax
import jax.numpy as jnp
from jax.experimental import pallas as pl
from jax.experimental.pallas import tpu as pltpu

LANES = 128      # lane width of a vreg
SUBLANES = 8     # sublane depth of a vreg (f32)

KSIZE = 5
STRIDE = 2
C_OUT = 8
BRANCH = 16
OUT_FEATURES = 64


# ----------------------------------------------------------------------------
# Fused Pallas kernel: feature matmul -> fuse matmul -> actor head
# ----------------------------------------------------------------------------
def _actor_fused_kernel(xin_ref, wfeat_ref, bfeat_ref, wfuse_ref, bfuse_ref,
                        wmu_ref, bmu_ref, mu_ref):
    """Whole Actor forward on one VMEM-resident (8*k, 128) tile set.

    feat = relu(xin @ W_feat + b_feat)   # conv-as-Toeplitz + block-diag branches
    h    = relu(feat @ W_fuse + b_fuse)
    mu   = tanh(h @ W_mu + b_mu)
    """
    xin = xin_ref[...]
    feat = jnp.maximum(
        jnp.dot(xin, wfeat_ref[...], preferred_element_type=jnp.float32)
        + bfeat_ref[...], 0.0)
    h = jnp.maximum(
        jnp.dot(feat, wfuse_ref[...], preferred_element_type=jnp.float32)
        + bfuse_ref[...], 0.0)
    mu_ref[...] = jnp.tanh(
        jnp.dot(h, wmu_ref[...], preferred_element_type=jnp.float32)
        + bmu_ref[...])


def _actor_fused_call(xin, w_feat, b_feat, w_fuse, b_fuse, w_mu, b_mu):
    b_pad = xin.shape[0]
    full2d = lambda i: (0, 0)
    return pl.pallas_call(
        _actor_fused_kernel,
        out_shape=jax.ShapeDtypeStruct((b_pad, LANES), jnp.float32),
        grid=(1,),
        in_specs=[
            pl.BlockSpec((b_pad, LANES), full2d),
            pl.BlockSpec((LANES, LANES), full2d),
            pl.BlockSpec((1, LANES), full2d),
            pl.BlockSpec((LANES, LANES), full2d),
            pl.BlockSpec((1, LANES), full2d),
            pl.BlockSpec((LANES, LANES), full2d),
            pl.BlockSpec((1, LANES), full2d),
        ],
        out_specs=pl.BlockSpec((b_pad, LANES), full2d),
        compiler_params=pltpu.CompilerParams(
            dimension_semantics=("arbitrary",)),
    )(xin, w_feat, b_feat, w_fuse, b_fuse, w_mu, b_mu)


# ----------------------------------------------------------------------------
# Parameters: raw (reference) weights + lane-dense padded fused weights
# ----------------------------------------------------------------------------
def _uniform(key, shape, fan_in):
    lim = 1.0 / jnp.sqrt(jnp.float32(fan_in))
    return jax.random.uniform(key, shape, jnp.float32, -lim, lim)


def init_actor_params(scan_size, key):
    l_out = (scan_size - KSIZE) // STRIDE + 1
    conv_feat = l_out * C_OUT                  # conv features (channel-major)
    branch_feat = 3 * BRANCH                   # orientation/distance/velocity
    feat_dim = conv_feat + branch_feat
    in_dim = scan_size + 5
    assert in_dim <= LANES and feat_dim <= LANES and OUT_FEATURES <= LANES

    ks = jax.random.split(key, 12)
    # raw parameters (same distributions / shapes as the unfused version)
    conv_w = _uniform(ks[0], (KSIZE, C_OUT), KSIZE)
    conv_b = _uniform(ks[1], (C_OUT,), KSIZE)
    or_w = _uniform(ks[2], (2, BRANCH), 2)
    or_b = _uniform(ks[3], (BRANCH,), 2)
    d_w = _uniform(ks[4], (1, BRANCH), 1)
    d_b = _uniform(ks[5], (BRANCH,), 1)
    v_w = _uniform(ks[6], (2, BRANCH), 2)
    v_b = _uniform(ks[7], (BRANCH,), 2)
    fuse_w = _uniform(ks[8], (feat_dim, OUT_FEATURES), feat_dim)
    fuse_b = _uniform(ks[9], (OUT_FEATURES,), feat_dim)
    # initialize_output_weights(self.mu, 'actor'): small output init
    mu_w = 0.01 * jax.random.normal(ks[10], (OUT_FEATURES, 2), jnp.float32)
    mu_b = jnp.zeros((2,), jnp.float32)
    log_std = jnp.zeros((2,), jnp.float32)     # nn.Parameter(torch.zeros(2))

    # --- conv1d as a Toeplitz matmul (channel-major flatten, PyTorch order):
    #     W_toep[j*STRIDE + k, c*l_out + j] = conv_w[k, c]
    w_toep = jnp.zeros((scan_size, conv_feat), jnp.float32)
    for j in range(l_out):
        w_toep = w_toep.at[j * STRIDE:j * STRIDE + KSIZE, j::l_out].set(conv_w)
    b_toep = jnp.repeat(conv_b, l_out)         # bias per channel, tiled over j

    # --- three branch layers as one block-diagonal (5, 3*BRANCH) weight
    w_branch = jnp.zeros((5, branch_feat), jnp.float32)
    w_branch = w_branch.at[0:2, 0:BRANCH].set(or_w)
    w_branch = w_branch.at[2:3, BRANCH:2 * BRANCH].set(d_w)
    w_branch = w_branch.at[3:5, 2 * BRANCH:3 * BRANCH].set(v_w)
    b_branch = jnp.concatenate([or_b, d_b, v_b])

    # --- lane-dense (128, 128) padded fused weights
    w_feat = jnp.zeros((LANES, LANES), jnp.float32)
    w_feat = w_feat.at[0:scan_size, 0:conv_feat].set(w_toep)
    w_feat = w_feat.at[scan_size:scan_size + 5, conv_feat:feat_dim].set(w_branch)
    b_feat = jnp.zeros((1, LANES), jnp.float32)
    b_feat = b_feat.at[0, 0:conv_feat].set(b_toep)
    b_feat = b_feat.at[0, conv_feat:feat_dim].set(b_branch)

    w_fuse = jnp.zeros((LANES, LANES), jnp.float32)
    w_fuse = w_fuse.at[0:feat_dim, 0:OUT_FEATURES].set(fuse_w)
    b_fuse = jnp.zeros((1, LANES), jnp.float32)
    b_fuse = b_fuse.at[0, 0:OUT_FEATURES].set(fuse_b)

    w_mu = jnp.zeros((LANES, LANES), jnp.float32)
    w_mu = w_mu.at[0:OUT_FEATURES, 0:2].set(mu_w)
    b_mu = jnp.zeros((1, LANES), jnp.float32)
    b_mu = b_mu.at[0, 0:2].set(mu_b)

    return {
        "w_feat": w_feat, "b_feat": b_feat,
        "w_fuse": w_fuse, "b_fuse": b_fuse,
        "w_mu": w_mu, "b_mu": b_mu,
        "log_std": log_std,
        # raw weights kept only for the pure-JAX correctness reference
        "ref": {
            "conv_w": conv_w, "conv_b": conv_b,
            "or_w": or_w, "or_b": or_b,
            "d_w": d_w, "d_b": d_b,
            "v_w": v_w, "v_b": v_b,
            "fuse_w": fuse_w, "fuse_b": fuse_b,
            "mu_w": mu_w, "mu_b": mu_b,
            "log_std": log_std,
        },
    }


# ----------------------------------------------------------------------------
# Forward pass (== Actor.forward)
# ----------------------------------------------------------------------------
@jax.jit
def actor_forward(params, laser, orientation_to_goal, distance_to_goal, velocity):
    B, scan = laser.shape
    b_pad = max(SUBLANES, ((B + SUBLANES - 1) // SUBLANES) * SUBLANES)

    # Single lane-packed input slab: [laser | orientation | distance | velocity]
    xin = jnp.concatenate(
        [laser, orientation_to_goal, distance_to_goal, velocity], axis=-1)
    xin = jnp.pad(xin, ((0, b_pad - B), (0, LANES - xin.shape[1])))

    mu_padded = _actor_fused_call(
        xin, params["w_feat"], params["b_feat"],
        params["w_fuse"], params["b_fuse"],
        params["w_mu"], params["b_mu"])
    mu = mu_padded[:B, :2]

    # var = exp(log_std)^2 is input-independent -> hoisted out of the kernel.
    var = jnp.exp(2.0 * params["log_std"])
    return mu, var  # mu: (B, 2) float32, var: (2,) float32


# ----------------------------------------------------------------------------
# Pure-JAX reference of the same (unfused) math, for correctness checking
# ----------------------------------------------------------------------------
def _reference_forward(params, laser, orientation_to_goal, distance_to_goal,
                       velocity):
    r = params["ref"]
    B, L = laser.shape
    l_out = (L - KSIZE) // STRIDE + 1
    patches = jnp.stack(
        [laser[:, k:k + STRIDE * l_out:STRIDE] for k in range(KSIZE)], axis=-1)
    y = jnp.maximum(
        jnp.einsum("bjk,kc->bjc", patches, r["conv_w"]) + r["conv_b"], 0.0)
    h_laser = jnp.transpose(y, (0, 2, 1)).reshape(B, -1)   # channel-major
    h_or = jnp.maximum(orientation_to_goal @ r["or_w"] + r["or_b"], 0.0)
    h_d = jnp.maximum(distance_to_goal @ r["d_w"] + r["d_b"], 0.0)
    h_v = jnp.maximum(velocity @ r["v_w"] + r["v_b"], 0.0)
    feat = jnp.concatenate([h_laser, h_or, h_d, h_v], axis=-1)
    x = jnp.maximum(feat @ r["fuse_w"] + r["fuse_b"], 0.0)
    mu = jnp.tanh(x @ r["mu_w"] + r["mu_b"])
    var = jnp.exp(r["log_std"]) ** 2
    return mu, var


# ----------------------------------------------------------------------------
if __name__ == "__main__":
    key = jax.random.PRNGKey(0)
    k_par, k_l, k_o, k_d, k_v = jax.random.split(key, 5)

    batch, scan_size = 2, 16
    params = init_actor_params(scan_size, k_par)

    laser = jax.random.normal(k_l, (batch, scan_size), jnp.float32)
    orientation_to_goal = jax.random.normal(k_o, (batch, 2), jnp.float32)
    distance_to_goal = jax.random.normal(k_d, (batch, 1), jnp.float32)
    velocity = jax.random.normal(k_v, (batch, 2), jnp.float32)

    mu, var = actor_forward(params, laser, orientation_to_goal,
                            distance_to_goal, velocity)
    jax.block_until_ready((mu, var))

    mu_ref, var_ref = _reference_forward(params, laser, orientation_to_goal,
                                         distance_to_goal, velocity)

    assert mu.shape == (batch, 2) and var.shape == (2,)
    assert bool(jnp.all(jnp.abs(mu) <= 1.0))                       # tanh range
    assert bool(jnp.allclose(var, jnp.ones(2)))                    # log_std = 0
    assert bool(jnp.allclose(mu, mu_ref, atol=1e-3, rtol=1e-3))    # fused == ref
    assert bool(jnp.allclose(var, var_ref, atol=1e-6))
    print("KERNEL_OK")
</pallas_src>

<mosaic_0001>
module attributes {stable_mosaic.version = 11 : i64} {
  func.func @_actor_fused_kernel(%arg0: i32, %arg1: memref<8x128xf32, #tpu.memory_space<vmem>>, %arg2: memref<128x128xf32, #tpu.memory_space<vmem>>, %arg3: memref<1x128xf32, #tpu.memory_space<vmem>>, %arg4: memref<128x128xf32, #tpu.memory_space<vmem>>, %arg5: memref<1x128xf32, #tpu.memory_space<vmem>>, %arg6: memref<128x128xf32, #tpu.memory_space<vmem>>, %arg7: memref<1x128xf32, #tpu.memory_space<vmem>>, %arg8: memref<8x128xf32, #tpu.memory_space<vmem>>) attributes {dimension_semantics = [#tpu.dimension_semantics<arbitrary>], iteration_bounds = array<i64: 1>, scalar_prefetch = 0 : i64, scratch_operands = 0 : i64, tpu.core_type = #tpu.core_type<tc>, window_params = [{pipeline_mode = #tpu.pipeline_mode<synchronous>, transform_indices = @transform_0, window_bounds = array<i64: 8, 128>}, {pipeline_mode = #tpu.pipeline_mode<synchronous>, transform_indices = @transform_1, window_bounds = array<i64: 128, 128>}, {pipeline_mode = #tpu.pipeline_mode<synchronous>, transform_indices = @transform_2, window_bounds = array<i64: 1, 128>}, {pipeline_mode = #tpu.pipeline_mode<synchronous>, transform_indices = @transform_3, window_bounds = array<i64: 128, 128>}, {pipeline_mode = #tpu.pipeline_mode<synchronous>, transform_indices = @transform_4, window_bounds = array<i64: 1, 128>}, {pipeline_mode = #tpu.pipeline_mode<synchronous>, transform_indices = @transform_5, window_bounds = array<i64: 128, 128>}, {pipeline_mode = #tpu.pipeline_mode<synchronous>, transform_indices = @transform_6, window_bounds = array<i64: 1, 128>}, {pipeline_mode = #tpu.pipeline_mode<synchronous>, transform_indices = @transform_7, window_bounds = array<i64: 8, 128>}]} {
    %c0 = arith.constant 0 : index
    %c0_0 = arith.constant 0 : index
    %0 = vector.load %arg1[%c0, %c0_0] : memref<8x128xf32, #tpu.memory_space<vmem>>, vector<8x128xf32>
    %c0_1 = arith.constant 0 : index
    %c0_2 = arith.constant 0 : index
    %1 = vector.load %arg2[%c0_1, %c0_2] : memref<128x128xf32, #tpu.memory_space<vmem>>, vector<128x128xf32>
    %cst = arith.constant dense<0.000000e+00> : vector<8x128xf32>
    %2 = tpu.matmul %0, %1, %cst {dimension_numbers = #tpu.dot_dimension_numbers<[1], [0], [0], [1], [0, 0, 1, 1], [], []>} : vector<8x128xf32>, vector<128x128xf32>, vector<8x128xf32> -> vector<8x128xf32>
    %c0_3 = arith.constant 0 : index
    %c0_4 = arith.constant 0 : index
    %3 = vector.load %arg3[%c0_3, %c0_4] : memref<1x128xf32, #tpu.memory_space<vmem>>, vector<1x128xf32>
    %4 = vector.broadcast %3 : vector<1x128xf32> to vector<8x128xf32>
    %5 = arith.addf %2, %4 : vector<8x128xf32>
    %cst_5 = arith.constant 0.000000e+00 : f32
    %6 = vector.broadcast %cst_5 : f32 to vector<8x128xf32>
    %7 = arith.maximumf %5, %6 : vector<8x128xf32>
    %c0_6 = arith.constant 0 : index
    %c0_7 = arith.constant 0 : index
    %8 = vector.load %arg4[%c0_6, %c0_7] : memref<128x128xf32, #tpu.memory_space<vmem>>, vector<128x128xf32>
    %cst_8 = arith.constant dense<0.000000e+00> : vector<8x128xf32>
    %9 = tpu.matmul %7, %8, %cst_8 {dimension_numbers = #tpu.dot_dimension_numbers<[1], [0], [0], [1], [0, 0, 1, 1], [], []>} : vector<8x128xf32>, vector<128x128xf32>, vector<8x128xf32> -> vector<8x128xf32>
    %c0_9 = arith.constant 0 : index
    %c0_10 = arith.constant 0 : index
    %10 = vector.load %arg5[%c0_9, %c0_10] : memref<1x128xf32, #tpu.memory_space<vmem>>, vector<1x128xf32>
    %11 = vector.broadcast %10 : vector<1x128xf32> to vector<8x128xf32>
    %12 = arith.addf %9, %11 : vector<8x128xf32>
    %cst_11 = arith.constant 0.000000e+00 : f32
    %13 = vector.broadcast %cst_11 : f32 to vector<8x128xf32>
    %14 = arith.maximumf %12, %13 : vector<8x128xf32>
    %c0_12 = arith.constant 0 : index
    %c0_13 = arith.constant 0 : index
    %15 = vector.load %arg6[%c0_12, %c0_13] : memref<128x128xf32, #tpu.memory_space<vmem>>, vector<128x128xf32>
    %cst_14 = arith.constant dense<0.000000e+00> : vector<8x128xf32>
    %16 = tpu.matmul %14, %15, %cst_14 {dimension_numbers = #tpu.dot_dimension_numbers<[1], [0], [0], [1], [0, 0, 1, 1], [], []>} : vector<8x128xf32>, vector<128x128xf32>, vector<8x128xf32> -> vector<8x128xf32>
    %c0_15 = arith.constant 0 : index
    %c0_16 = arith.constant 0 : index
    %17 = vector.load %arg7[%c0_15, %c0_16] : memref<1x128xf32, #tpu.memory_space<vmem>>, vector<1x128xf32>
    %18 = vector.broadcast %17 : vector<1x128xf32> to vector<8x128xf32>
    %19 = arith.addf %16, %18 : vector<8x128xf32>
    %20 = math.tanh %19 : vector<8x128xf32>
    %c0_17 = arith.constant 0 : index
    %c0_18 = arith.constant 0 : index
    %21 = vector.load %arg8[%c0_17, %c0_18] : memref<8x128xf32, #tpu.memory_space<vmem>>, vector<8x128xf32>
    tpu.vector_store %arg8[%c0_17, %c0_18], %20 {strides = array<i32>} : memref<8x128xf32, #tpu.memory_space<vmem>>, vector<8x128xf32>,
    return
  }
  func.func @transform_0(%arg0: i32) -> (i32, i32) {
    %c0_i32 = arith.constant 0 : i32
    %c0_i32_0 = arith.constant 0 : i32
    %c0_i32_1 = arith.constant 0 : i32
    return %c0_i32, %c0_i32_0 : i32, i32
  }
  func.func @transform_1(%arg0: i32) -> (i32, i32) {
    %c0_i32 = arith.constant 0 : i32
    %c0_i32_0 = arith.constant 0 : i32
    %c0_i32_1 = arith.constant 0 : i32
    return %c0_i32, %c0_i32_0 : i32, i32
  }
  func.func @transform_2(%arg0: i32) -> (i32, i32) {
    %c0_i32 = arith.constant 0 : i32
    %c0_i32_0 = arith.constant 0 : i32
    %c0_i32_1 = arith.constant 0 : i32
    return %c0_i32, %c0_i32_0 : i32, i32
  }
  func.func @transform_3(%arg0: i32) -> (i32, i32) {
    %c0_i32 = arith.constant 0 : i32
    %c0_i32_0 = arith.constant 0 : i32
    %c0_i32_1 = arith.constant 0 : i32
    return %c0_i32, %c0_i32_0 : i32, i32
  }
  func.func @transform_4(%arg0: i32) -> (i32, i32) {
    %c0_i32 = arith.constant 0 : i32
    %c0_i32_0 = arith.constant 0 : i32
    %c0_i32_1 = arith.constant 0 : i32
    return %c0_i32, %c0_i32_0 : i32, i32
  }
  func.func @transform_5(%arg0: i32) -> (i32, i32) {
    %c0_i32 = arith.constant 0 : i32
    %c0_i32_0 = arith.constant 0 : i32
    %c0_i32_1 = arith.constant 0 : i32
    return %c0_i32, %c0_i32_0 : i32, i32
  }
  func.func @transform_6(%arg0: i32) -> (i32, i32) {
    %c0_i32 = arith.constant 0 : i32
    %c0_i32_0 = arith.constant 0 : i32
    %c0_i32_1 = arith.constant 0 : i32
    return %c0_i32, %c0_i32_0 : i32, i32
  }
  func.func @transform_7(%arg0: i32) -> (i32, i32) {
    %c0_i32 = arith.constant 0 : i32
    %c0_i32_0 = arith.constant 0 : i32
    %c0_i32_1 = arith.constant 0 : i32
    return %c0_i32, %c0_i32_0 : i32, i32
  }
}

</mosaic_0001>

<bundles_post_ra>
// kernel: actor_forward.1
= control target key start
LH: loop header
LB: loop body
LE: loop exit
PB: predicated region body
PF: predicated region fallthrough
CT: control target
= control target key end

     0   :  { %12 = vsyncpa [#allocation3], 0  ;;  %s359_s0 = inlined_call_operand.vmem [shape: f32[8,128], index: 0, kind: input, shape index: {}]   ;;  %s360_s1 = inlined_call_operand.hbm [shape: f32[128,128], index: 1, kind: input, shape index: {}]   ;;  %s361_s2 = inlined_call_operand.vmem [shape: f32[1,128], index: 2, kind: input, shape index: {}]   ;;  %s362_s3 = inlined_call_operand.hbm [shape: f32[128,128], index: 3, kind: input, shape index: {}]   ;;  %s363_s4 = inlined_call_operand.vmem [shape: f32[1,128], index: 4, kind: input, shape index: {}]   ;;  %s364_s5 = inlined_call_operand.hbm [shape: f32[128,128], index: 5, kind: input, shape index: {}]   ;;  %s365_s6 = inlined_call_operand.vmem [shape: f32[1,128], index: 6, kind: input, shape index: {}]   ;;  %s366_s7 = inlined_call_operand.vmem [shape: f32[8,128], index: 7, kind: output, shape index: {}]  }
   0x1   :  { %13 = vsyncpa [#allocation5], 0  ;;  %s35_s26 = sshll.u32 %s362_s3, 4  ;;  %s290_s27 = smov [#allocation4]   ;;  %s36_s26 = int_to_ptr.hbm [resolvable:$true] %s35_s26 }
   0x2   :  { %s37_s28 = sshll.u32 %s290_s27, 4  ;;  %s20_s8 = sshll.u32 %s360_s1, 4  ;;  %s38_s28 = int_to_ptr.vmem [resolvable:$true] %s37_s28  ;;  %s21_s8 = int_to_ptr.hbm [resolvable:$true] %s20_s8 }
   0x3   :  { %s291_s9 = smov 128   ;;  %s292_s10 = smov 8  }
   0x4   :  { %43 = dma.hbm_to_vmem [thread:$0]  %s36_s26, 2048, %s38_s28, [#allocation5], %s291_s9, %s291_s9, %s292_s10  }
   0x5   :  { %s293_s11 = smov [#allocation2]   ;;  %s50_s15 = sshll.u32 %s364_s5, 4  ;;  %s51_s15 = int_to_ptr.hbm [resolvable:$true] %s50_s15 }
   0x6   :  { %s22_s12 = sshll.u32 %s293_s11, 4  ;;  %s294_s3 = smov [#allocation6]   ;;  %s23_s12 = int_to_ptr.vmem [resolvable:$true] %s22_s12 }
   0x7   :  { %28 = dma.hbm_to_vmem [thread:$0]  %s21_s8, 2048, %s23_s12, [#allocation3], %s291_s9, %s291_s9, %s292_s10  }
   0x8   :  { %s52_s16 = sshll.u32 %s294_s3, 4  ;;  %s53_s16 = int_to_ptr.vmem [resolvable:$true] %s52_s16 }
   0x9   :  { %58 = dma.hbm_to_vmem [thread:$0]  %s51_s15, 2048, %s53_s16, [#allocation5], %s291_s9, %s291_s9, %s292_s10  }
   0xa   :  { %286 = dma.done.wait [#allocation3], 2048  }
   0xb   :  { %287 = vsyncadd [#allocation3], 4294965248 }
   0xc   :  { %288 = dma.done.wait [#allocation5], 4096  }
   0xd   :  { %289 = vsyncadd [#allocation5], 4294963200  ;;  %v89_v0 = vld [vmem:[#allocation2 + $0x78] sm:$0xff]  ;;  %v88_v1 = vld [vmem:[#allocation2 + $0x70] sm:$0xff] }
   0xe   :  { %94 = vmatpush.msra.mxu0 %v89_v0  ;;  %v87_v2 = vld [vmem:[#allocation2 + $0x68] sm:$0xff]  ;;  %v86_v3 = vld [vmem:[#allocation2 + $0x60] sm:$0xff]  ;;  %v130_v4 = vld [vmem:[#allocation4 + $0x78] sm:$0xff] }
   0xf   :  { %v85_v5 = vld [vmem:[#allocation2 + $0x58] sm:$0xff]  ;;  %135 = vmatpush.msra.mxu1 %v130_v4  ;;  %v129_v6 = vld [vmem:[#allocation4 + $0x70] sm:$0xff]  ;;  %v128_v7 = vld [vmem:[#allocation4 + $0x68] sm:$0xff] }
  0x10   :  { %95 = vmatpush.msra.mxu0 %v88_v1  ;;  %v84_v8 = vld [vmem:[#allocation2 + $0x50] sm:$0xff]  ;;  %v127_v9 = vld [vmem:[#allocation4 + $0x60] sm:$0xff]  ;;  %v83_v10 = vld [vmem:[#allocation2 + $0x48] sm:$0xff] }
  0x11   :  { %136 = vmatpush.msra.mxu1 %v129_v6  ;;  %v126_v11 = vld [vmem:[#allocation4 + $0x58] sm:$0xff]  ;;  %v82_v12 = vld [vmem:[#allocation2 + $0x40] sm:$0xff]  ;;  %v125_v13 = vld [vmem:[#allocation4 + $0x50] sm:$0xff] }
  0x12   :  { %96 = vmatpush.msra.mxu0 %v87_v2  ;;  %v81_v14 = vld [vmem:[#allocation2 + $0x38] sm:$0xff]  ;;  %v124_v15 = vld [vmem:[#allocation4 + $0x48] sm:$0xff]  ;;  %v80_v16 = vld [vmem:[#allocation2 + $0x30] sm:$0xff] }
  0x13   :  { %137 = vmatpush.msra.mxu1 %v128_v7  ;;  %v123_v17 = vld [vmem:[#allocation4 + $0x40] sm:$0xff]  ;;  %v79_v18 = vld [vmem:[#allocation2 + $0x28] sm:$0xff]  ;;  %v122_v19 = vld [vmem:[#allocation4 + $0x38] sm:$0xff] }
  0x14   :  { %97 = vmatpush.msra.mxu0 %v86_v3  ;;  %v78_v20 = vld [vmem:[#allocation2 + $0x20] sm:$0xff]  ;;  %v121_v21 = vld [vmem:[#allocation4 + $0x30] sm:$0xff]  ;;  %v77_v22 = vld [vmem:[#allocation2 + $0x18] sm:$0xff] }
  0x15   :  { %138 = vmatpush.msra.mxu1 %v127_v9  ;;  %v120_v23 = vld [vmem:[#allocation4 + $0x28] sm:$0xff]  ;;  %v76_v24 = vld [vmem:[#allocation2 + $0x10] sm:$0xff]  ;;  %v119_v25 = vld [vmem:[#allocation4 + $0x20] sm:$0xff] }
  0x16   :  { %98 = vmatpush.msra.mxu0 %v85_v5  ;;  %v75_v26 = vld [vmem:[#allocation2 + $0x8] sm:$0xff]  ;;  %v118_v27 = vld [vmem:[#allocation4 + $0x18] sm:$0xff]  ;;  %v74_v28 = vld [vmem:[#allocation2] sm:$0xff] }
  0x17   :  { %139 = vmatpush.msra.mxu1 %v126_v11  ;;  %v73_v29 = vld [vmem:[%s359_s0] sm:$0xff]  ;;  %v117_v30 = vld [vmem:[#allocation4 + $0x10] sm:$0xff]  ;;  %v116_v31 = vld [vmem:[#allocation4 + $0x8] sm:$0xff] }
  0x18   :  { %99 = vmatpush.msra.mxu0 %v84_v8  ;;  %v115_v32 = vld [vmem:[#allocation4] sm:$0xff]  ;;  %v171_v33 = vld [vmem:[#allocation6 + $0x78] sm:$0xff]  ;;  %v170_v34 = vld [vmem:[#allocation6 + $0x70] sm:$0xff] }
  0x19   :  { %140 = vmatpush.msra.mxu1 %v125_v13  ;;  %176 = vmatpush.msra.mxu2 %v171_v33  ;;  %v169_v35 = vld [vmem:[#allocation6 + $0x68] sm:$0xff]  ;;  %v168_v36 = vld [vmem:[#allocation6 + $0x60] sm:$0xff]  ;;  %v167_v37 = vld [vmem:[#allocation6 + $0x58] sm:$0xff] }
  0x1a   :  { %100 = vmatpush.msra.mxu0 %v83_v10  ;;  %v166_v38 = vld [vmem:[#allocation6 + $0x50] sm:$0xff]  ;;  %v165_v39 = vld [vmem:[#allocation6 + $0x48] sm:$0xff]  ;;  %v164_v40 = vld [vmem:[#allocation6 + $0x40] sm:$0xff] }
  0x1b   :  { %141 = vmatpush.msra.mxu1 %v124_v15  ;;  %177 = vmatpush.msra.mxu2 %v170_v34  ;;  %v163_v41 = vld [vmem:[#allocation6 + $0x38] sm:$0xff]  ;;  %v162_v42 = vld [vmem:[#allocation6 + $0x30] sm:$0xff]  ;;  %v161_v43 = vld [vmem:[#allocation6 + $0x28] sm:$0xff] }
  0x1c   :  { %101 = vmatpush.msra.mxu0 %v82_v12  ;;  %v160_v44 = vld [vmem:[#allocation6 + $0x20] sm:$0xff]  ;;  %v159_v45 = vld [vmem:[#allocation6 + $0x18] sm:$0xff]  ;;  %v158_v50 = vld [vmem:[#allocation6 + $0x10] sm:$0xff] }
  0x1d   :  { %142 = vmatpush.msra.mxu1 %v123_v17  ;;  %178 = vmatpush.msra.mxu2 %v169_v35  ;;  %v209_v46 = vld [vmem:[%s361_s2] ss:$0 sm:$0xff]  ;;  %v157_v51 = vld [vmem:[#allocation6 + $0x8] sm:$0xff] }
  0x1e   :  { %102 = vmatpush.msra.mxu0 %v81_v14  ;;  %v156_v52 = vld [vmem:[#allocation6] sm:$0xff] }
  0x1f   :  { %143 = vmatpush.msra.mxu1 %v122_v19  ;;  %179 = vmatpush.msra.mxu2 %v168_v36  ;;  %v210_v53 = vld [vmem:[%s363_s4] ss:$0 sm:$0xff] }
  0x20   :  { %103 = vmatpush.msra.mxu0 %v80_v16  ;;  %v211_v57 = vld [vmem:[%s365_s6] ss:$0 sm:$0xff] }
  0x21   :  { %144 = vmatpush.msra.mxu1 %v121_v21  ;;  %180 = vmatpush.msra.mxu2 %v167_v37 }
  0x22   :  { %104 = vmatpush.msra.mxu0 %v79_v18 }
  0x23   :  { %145 = vmatpush.msra.mxu1 %v120_v23  ;;  %181 = vmatpush.msra.mxu2 %v166_v38 }
  0x24   :  { %105 = vmatpush.msra.mxu0 %v78_v20 }
  0x25   :  { %146 = vmatpush.msra.mxu1 %v119_v25  ;;  %182 = vmatpush.msra.mxu2 %v165_v39 }
  0x26   :  { %106 = vmatpush.msra.mxu0 %v77_v22 }
  0x27   :  { %147 = vmatpush.msra.mxu1 %v118_v27  ;;  %183 = vmatpush.msra.mxu2 %v164_v40 }
  0x28   :  { %107 = vmatpush.msra.mxu0 %v76_v24 }
  0x29   :  { %148 = vmatpush.msra.mxu1 %v117_v30  ;;  %184 = vmatpush.msra.mxu2 %v163_v41 }
  0x2a   :  { %108 = vmatpush.msra.mxu0 %v75_v26 }
  0x2b   :  { %149 = vmatpush.msra.mxu1 %v116_v31  ;;  %185 = vmatpush.msra.mxu2 %v162_v42 }
  0x2c   :  { %109 = vmatpush.msra.mxu0 %v74_v28 }
  0x2d   :  { %110 = vmatmul.f32.vlgmr.msra.gmra.mxu0 %v73_v29  ;;  %150 = vmatpush.msra.mxu1 %v115_v32 }
  0x2e   :  { %186 = vmatpush.msra.mxu2 %v161_v43 }
  0x30   :  { %187 = vmatpush.msra.mxu2 %v160_v44 }
  0x32   :  { %188 = vmatpush.msra.mxu2 %v159_v45 }
  0x34   :  { %189 = vmatpush.msra.mxu2 %v158_v50 }
  0x36   :  { %190 = vmatpush.msra.mxu2 %v157_v51 }
  0x38   :  { %191 = vmatpush.msra.mxu2 %v156_v52 }
  0xaa   :  { %v111_v47 = vpop.f32.mrf.mxu0 }
  0xab   :  { %v112_v48 = vadd.f32 %v209_v46, %v111_v47 }
  0xad   :  { %v114_v49 = vmax.f32 %v112_v48, 0.0 }
  0xaf   :  { %151 = vmatmul.f32.vlgmr.msra.gmra.mxu1 %v114_v49 }
 0x12c   :  { %v152_v54 = vpop.f32.mrf.mxu1 }
 0x12d   :  { %v153_v55 = vadd.f32 %v210_v53, %v152_v54 }
 0x12f   :  { %v155_v56 = vmax.f32 %v153_v55, 0.0 }
 0x131   :  { %192 = vmatmul.f32.vlgmr.msra.gmra.mxu2 %v155_v56 }
 0x1b4   :  { %v193_v58 = vpop.f32.mrf.mxu2 }
 0x1b5   :  { %v194_v59 = vadd.f32 %v211_v57, %v193_v58 }
 0x1b7   :  { %212 = vtanh.f32 %v194_v59 }
 0x1bd   :  { %v213_v60 = vpop.eup %212 }
 0x1be   :  { %197 = vst [vmem:[%s366_s7] sm:$0xff] %v213_v60 }
 0x1bf   :  { %202 = vsyncpa [#allocation3], 1 }
 0x1c0   :  { %203 = vsyncpa [#allocation5], 1 }

</bundles_post_ra>
